<compile_context>
chip_gen: v7x
topology: tpu7x:2x2x1
jax: 0.10.0
libtpu: 0.0.40
codegen_flags: <defaults>
</compile_context>

<pallas_src>
import jax
import jax.numpy as jnp
from jax.experimental import pallas as pl
from jax.experimental.pallas import tpu as pltpu

# Module hyper-parameters (from the PyTorch source)
beta = 0.95
threshold = 1.0          # snn.Leaky default threshold
num_hidden = 5
num_inputs = 260
num_outputs = 10
batch_size = 1
num_steps = batch_size   # as in the reference module

H_PAD = 128              # hidden dim padded to a full lane width
OUT_PAD = 128            # output dim padded to a full lane width


def snn_series_kernel(x_ref, w1p_ref, p2_ref, out_ref):
    """Whole forward pass in one kernel: 2 MXU matmuls + LIF dynamics on the VPU.

    Layouts (all fp32, whole arrays resident in VMEM, single grid point):
      x_ref   : (B, num_inputs=260)
      w1p_ref : (num_inputs=260, H_PAD=128)   fc1 weight, hidden padded 5 -> 128 lanes
      p2_ref  : (H_PAD + 2, OUT_PAD=128)      rows 0..127: fc2 weight (rows >=5 zero),
                                              row 128: fc1 bias, row 129: fc2 bias
      out_ref : (num_steps * B, OUT_PAD=128)  lane-dense spike record, step-major
    Padded lanes/rows are zero and provably stay zero through the LIF dynamics,
    so the wrapper's final slice to num_outputs is exact.
    """
    x = x_ref[...]                            # (B, 260)
    w1p = w1p_ref[...]                        # (260, 128)
    w2p = p2_ref[pl.ds(0, H_PAD), :]          # (128, 128)
    b1 = p2_ref[pl.ds(H_PAD, 1), :]           # (1, 128)
    b2 = p2_ref[pl.ds(H_PAD + 1, 1), :]       # (1, 128)

    B = x.shape[0]

    # fc1(x) is identical every step (x is loop-invariant in the module) -> hoist.
    cur1 = jnp.dot(x, w1p, preferred_element_type=jnp.float32) + b1   # (B, 128)

    # init_leaky(): membrane potentials start at zero.
    mem1 = jnp.zeros((B, H_PAD), jnp.float32)
    mem2 = jnp.zeros((B, OUT_PAD), jnp.float32)

    # num_steps == 1 (module constant), so a Python loop is the right tool here.
    for step in range(num_steps):
        # snntorch Leaky, reset_mechanism="subtract":
        #   reset from incoming mem, then mem = beta*mem + cur - reset*thresh,
        #   spk = heaviside(mem - thresh)  (strict >).
        reset1 = (mem1 > threshold).astype(jnp.float32)
        mem1 = beta * mem1 + cur1 - reset1 * threshold
        spk1 = (mem1 > threshold).astype(jnp.float32)          # (B, 128), lanes >=5 stay 0

        cur2 = jnp.dot(spk1, w2p, preferred_element_type=jnp.float32) + b2  # (B, 128)
        reset2 = (mem2 > threshold).astype(jnp.float32)
        mem2 = beta * mem2 + cur2 - reset2 * threshold
        spk2 = (mem2 > threshold).astype(jnp.float32)          # (B, 128), lanes >=10 stay 0

        # Lane-dense 128-wide store for this time step.
        out_ref[pl.ds(step * B, B), :] = spk2


def prepare_snn_params(w1, b1, w2, b2):
    """One-time layout plumbing (call once when weights load, NOT per inference).

    w1: (num_inputs, num_hidden); b1: (num_hidden,)
    w2: (num_hidden, num_outputs); b2: (num_outputs,)
    Returns (w1p, p2) fp32 slabs consumed by the kernel (3 operands total).
    """
    w1p = jnp.zeros((num_inputs, H_PAD), jnp.float32).at[:, :num_hidden].set(w1)
    p2 = jnp.zeros((H_PAD + 2, OUT_PAD), jnp.float32)
    p2 = p2.at[:num_hidden, :num_outputs].set(w2)     # fc2 weight (lane-padded)
    p2 = p2.at[H_PAD, :num_hidden].set(b1)            # fc1 bias row
    p2 = p2.at[H_PAD + 1, :num_outputs].set(b2)       # fc2 bias row
    return w1p, p2


@jax.jit
def snn_series_forward(x, w1p, p2):
    """x: (B, num_inputs) fp32; returns (num_steps, B, num_outputs) fp32 spikes."""
    B = x.shape[0]
    vmem = pltpu.MemorySpace.VMEM
    out_padded = pl.pallas_call(
        snn_series_kernel,
        out_shape=jax.ShapeDtypeStruct((num_steps * B, OUT_PAD), jnp.float32),
        in_specs=[pl.BlockSpec(memory_space=vmem)] * 3,
        out_specs=pl.BlockSpec(memory_space=vmem),
    )(x, w1p, p2)
    # Under jit this slice/reshape fuses into the same executable as the
    # pallas_call, so trimming the lane padding costs no extra dispatch.
    return out_padded[:, :num_outputs].reshape(num_steps, B, num_outputs)


def snn_series_reference(x, w1, b1, w2, b2):
    """Pure-JAX reference mirroring the PyTorch/snntorch semantics."""
    hp = jax.lax.Precision.HIGHEST
    B = x.shape[0]
    mem1 = jnp.zeros((B, num_hidden), jnp.float32)
    mem2 = jnp.zeros((B, num_outputs), jnp.float32)
    outs = []
    for _ in range(num_steps):
        cur1 = jnp.dot(x, w1, precision=hp) + b1
        reset1 = (mem1 > threshold).astype(jnp.float32)
        mem1 = beta * mem1 + cur1 - reset1 * threshold
        spk1 = (mem1 > threshold).astype(jnp.float32)

        cur2 = jnp.dot(spk1, w2, precision=hp) + b2
        reset2 = (mem2 > threshold).astype(jnp.float32)
        mem2 = beta * mem2 + cur2 - reset2 * threshold
        spk2 = (mem2 > threshold).astype(jnp.float32)
        outs.append(spk2)
    return jnp.stack(outs, axis=0)


if __name__ == "__main__":
    key = jax.random.PRNGKey(0)
    kx, k1, k2, k3, k4 = jax.random.split(key, 5)

    # Deterministic test data quantized to coarse power-of-two grids so every
    # intermediate sum is exactly representable in f32 (and bf16).  This makes the
    # strict 0/1 spike comparison bit-exact and robust to matmul precision /
    # accumulation-order differences between the MXU kernel and the XLA reference.
    def quantized_uniform(k, shape, lo, hi, grid):
        u = jax.random.uniform(k, shape, jnp.float32, lo, hi)
        return jnp.round(u * grid) / grid

    w1 = quantized_uniform(k1, (num_inputs, num_hidden), -0.5, 0.5, 16.0)
    b1 = quantized_uniform(k2, (num_hidden,), -0.5, 0.5, 16.0)
    w2 = quantized_uniform(k3, (num_hidden, num_outputs), -1.0, 1.0, 8.0)
    b2 = quantized_uniform(k4, (num_outputs,), -0.5, 0.5, 8.0)

    # Layout plumbing hoisted out of the per-call path (done once here).
    w1p, p2 = prepare_snn_params(w1, b1, w2, b2)

    # Run the module's exact configuration (B = batch_size = 1) and a batched call
    # (B = 16) that amortizes launch/DMA overhead across samples.
    for B in (batch_size, 16):
        x = quantized_uniform(kx, (B, num_inputs), -2.0, 2.0, 8.0)
        out = jax.block_until_ready(snn_series_forward(x, w1p, p2))
        ref = snn_series_reference(x, w1, b1, w2, b2)
        assert out.shape == (num_steps, B, num_outputs)
        assert jnp.array_equal(out, ref), f"Pallas kernel mismatch vs. reference (B={B})"

    print("KERNEL_OK")
</pallas_src>

<mosaic_0001>
module attributes {stable_mosaic.version = 11 : i64} {
  func.func @snn_series_kernel(%arg0: memref<1x260xf32, #tpu.memory_space<vmem>>, %arg1: memref<260x128xf32, #tpu.memory_space<vmem>>, %arg2: memref<130x128xf32, #tpu.memory_space<vmem>>, %arg3: memref<1x128xf32, #tpu.memory_space<vmem>>) attributes {dimension_semantics = [], scalar_prefetch = 0 : i64, scratch_operands = 0 : i64, tpu.core_type = #tpu.core_type<tc>} {
    %c0 = arith.constant 0 : index
    %c0_0 = arith.constant 0 : index
    %0 = vector.load %arg0[%c0, %c0_0] : memref<1x260xf32, #tpu.memory_space<vmem>>, vector<1x260xf32>
    %c0_1 = arith.constant 0 : index
    %c0_2 = arith.constant 0 : index
    %1 = vector.load %arg1[%c0_1, %c0_2] : memref<260x128xf32, #tpu.memory_space<vmem>>, vector<260x128xf32>
    %c0_3 = arith.constant 0 : index
    %c0_4 = arith.constant 0 : index
    %2 = vector.load %arg2[%c0_3, %c0_4] : memref<130x128xf32, #tpu.memory_space<vmem>>, vector<128x128xf32>
    %c128 = arith.constant 128 : index
    %c0_5 = arith.constant 0 : index
    %3 = vector.load %arg2[%c128, %c0_5] : memref<130x128xf32, #tpu.memory_space<vmem>>, vector<1x128xf32>
    %c129 = arith.constant 129 : index
    %c0_6 = arith.constant 0 : index
    %4 = vector.load %arg2[%c129, %c0_6] : memref<130x128xf32, #tpu.memory_space<vmem>>, vector<1x128xf32>
    %cst = arith.constant dense<0.000000e+00> : vector<1x128xf32>
    %5 = tpu.matmul %0, %1, %cst {dimension_numbers = #tpu.dot_dimension_numbers<[1], [0], [0], [1], [0, 0, 1, 1], [], []>} : vector<1x260xf32>, vector<260x128xf32>, vector<1x128xf32> -> vector<1x128xf32>
    %6 = arith.addf %5, %3 : vector<1x128xf32>
    %cst_7 = arith.constant 0.000000e+00 : f32
    %7 = vector.broadcast %cst_7 : f32 to vector<1x128xf32>
    %cst_8 = arith.constant 0.000000e+00 : f32
    %8 = vector.broadcast %cst_8 : f32 to vector<1x128xf32>
    %cst_9 = arith.constant 1.000000e+00 : f32
    %9 = vector.broadcast %cst_9 : f32 to vector<1x128xf32>
    %10 = arith.cmpf ogt, %7, %9 : vector<1x128xf32>
    %11 = arith.extui %10 : vector<1x128xi1> to vector<1x128xi32>
    %12 = arith.sitofp %11 : vector<1x128xi32> to vector<1x128xf32>
    %cst_10 = arith.constant 0.949999988 : f32
    %13 = vector.broadcast %cst_10 : f32 to vector<1x128xf32>
    %14 = arith.mulf %13, %7 : vector<1x128xf32>
    %15 = arith.addf %14, %6 : vector<1x128xf32>
    %cst_11 = arith.constant 1.000000e+00 : f32
    %16 = vector.broadcast %cst_11 : f32 to vector<1x128xf32>
    %17 = arith.mulf %12, %16 : vector<1x128xf32>
    %18 = arith.subf %15, %17 : vector<1x128xf32>
    %cst_12 = arith.constant 1.000000e+00 : f32
    %19 = vector.broadcast %cst_12 : f32 to vector<1x128xf32>
    %20 = arith.cmpf ogt, %18, %19 : vector<1x128xf32>
    %21 = arith.extui %20 : vector<1x128xi1> to vector<1x128xi32>
    %22 = arith.sitofp %21 : vector<1x128xi32> to vector<1x128xf32>
    %cst_13 = arith.constant dense<0.000000e+00> : vector<1x128xf32>
    %23 = tpu.matmul %22, %2, %cst_13 {dimension_numbers = #tpu.dot_dimension_numbers<[1], [0], [0], [1], [0, 0, 1, 1], [], []>} : vector<1x128xf32>, vector<128x128xf32>, vector<1x128xf32> -> vector<1x128xf32>
    %24 = arith.addf %23, %4 : vector<1x128xf32>
    %cst_14 = arith.constant 1.000000e+00 : f32
    %25 = vector.broadcast %cst_14 : f32 to vector<1x128xf32>
    %26 = arith.cmpf ogt, %8, %25 : vector<1x128xf32>
    %27 = arith.extui %26 : vector<1x128xi1> to vector<1x128xi32>
    %28 = arith.sitofp %27 : vector<1x128xi32> to vector<1x128xf32>
    %cst_15 = arith.constant 0.949999988 : f32
    %29 = vector.broadcast %cst_15 : f32 to vector<1x128xf32>
    %30 = arith.mulf %29, %8 : vector<1x128xf32>
    %31 = arith.addf %30, %24 : vector<1x128xf32>
    %cst_16 = arith.constant 1.000000e+00 : f32
    %32 = vector.broadcast %cst_16 : f32 to vector<1x128xf32>
    %33 = arith.mulf %28, %32 : vector<1x128xf32>
    %34 = arith.subf %31, %33 : vector<1x128xf32>
    %cst_17 = arith.constant 1.000000e+00 : f32
    %35 = vector.broadcast %cst_17 : f32 to vector<1x128xf32>
    %36 = arith.cmpf ogt, %34, %35 : vector<1x128xf32>
    %37 = arith.extui %36 : vector<1x128xi1> to vector<1x128xi32>
    %38 = arith.sitofp %37 : vector<1x128xi32> to vector<1x128xf32>
    %c0_18 = arith.constant 0 : index
    %c0_19 = arith.constant 0 : index
    %39 = vector.load %arg3[%c0_18, %c0_19] : memref<1x128xf32, #tpu.memory_space<vmem>>, vector<1x128xf32>
    tpu.vector_store %arg3[%c0_18, %c0_19], %38 {strides = array<i32>} : memref<1x128xf32, #tpu.memory_space<vmem>>, vector<1x128xf32>,
    return
  }
}

</mosaic_0001>

<bundles_post_ra>
// kernel: snn_series_forward.1
= control target key start
LH: loop header
LB: loop body
LE: loop exit
PB: predicated region body
PF: predicated region fallthrough
CT: control target
= control target key end

     0   :  { %8 = vsyncpa [#allocation3], 0  ;;  %s682_s0 = inlined_call_operand.hbm [shape: f32[1,260], index: 0, kind: input, shape index: {}]   ;;  %s683_s1 = inlined_call_operand.hbm [shape: f32[260,128], index: 1, kind: input, shape index: {}]   ;;  %s684_s2 = inlined_call_operand.hbm [shape: f32[130,128], index: 2, kind: input, shape index: {}]   ;;  %s685_s3 = inlined_call_operand.vmem [shape: f32[1,128], index: 3, kind: output, shape index: {}]  }
   0x1   :  { %9 = vsyncpa [#allocation5], 0  ;;  %s591_s12 = smov [#allocation4]   ;;  %s521_s16 = scalar_lea.hbm %s683_s1, 4224 }
   0x2   :  { %s25_s13 = sshll.u32 %s591_s12, 4  ;;  %p522_p0 = scmp.ne.s32.totalorder %s683_s1, %s521_s16  ;;  %s26_s13 = int_to_ptr.vmem [resolvable:$true] %s25_s13 }
   0x3   :  { %p525_p1 = scmp.lt.u32.totalorder %s521_s16, %s683_s1 }
   0x5   :  { %p527_p2 = pnand %p525_p1, %p522_p0 }
   0x7   :  { %530 = shalt.err (!%p527_p2)
}
   0x8   :  { %s531_s21 = scalar_lea.vmem %s26_s13, 4224  ;;  %p536_p4 = scmp.lt.s32.totalorder %s26_s13, %s26_s13 }
   0x9   :  { %p532_p3 = scmp.ne.s32.totalorder %s26_s13, %s531_s21  ;;  %p537_p5 = scmp.lt.s32.totalorder %s531_s21, %s531_s21 }
   0xb   :  { %p538_p6 = por %p537_p5, %p536_p4 }
   0xd   :  { %p539_p7 = pnand %p538_p6, %p532_p3 }
   0xf   :  { %542 = shalt.err (!%p539_p7)
}
  0x10   :  { %s592_s22 = smov 128   ;;  %s593_s23 = smov 8  }
  0x11   :  { %31 = dma.hbm_to_vmem [thread:$0]  %s683_s1, 4224, %s26_s13, [#allocation5], %s592_s22, %s592_s22, %s593_s23  }
  0x12   :  { %s594_s26 = smov [#allocation2]   ;;  %s595_s28 = smov [#allocation6]  }
  0x13   :  { %s16_s27 = sshll.u32 %s594_s26, 4  ;;  %s37_s29 = sshll.u32 %s595_s28, 4  ;;  %s17_s27 = int_to_ptr.vmem [resolvable:$true] %s16_s27  ;;  %s38_s29 = int_to_ptr.vmem [resolvable:$true] %s37_s29 }
  0x14   :  { %s543_s5 = scalar_lea.hbm %s682_s0, 48 }
  0x15   :  { %p544_p8 = scmp.ne.s32.totalorder %s682_s0, %s543_s5  ;;  %p547_p9 = scmp.lt.u32.totalorder %s543_s5, %s682_s0 }
  0x17   :  { %p549_p10 = pnand %p547_p9, %p544_p8 }
  0x19   :  { %552 = shalt.err (!%p549_p10)
}
  0x1a   :  { %s553_s1 = scalar_lea.vmem %s17_s27, 48  ;;  %s557_s10 = scalar_lea.vmem %s17_s27, 64 }
  0x1b   :  { %p554_p11 = scmp.ne.s32.totalorder %s17_s27, %s553_s1  ;;  %p558_p12 = scmp.lt.s32.totalorder %s17_s27, %s17_s27 }
  0x1c   :  { %p559_p13 = scmp.lt.s32.totalorder %s557_s10, %s553_s1 }
  0x1e   :  { %p560_p0 = por %p559_p13, %p558_p12 }
  0x20   :  { %p561_p1 = pnand %p560_p0, %p554_p11 }
  0x22   :  { %564 = shalt.err (!%p561_p1)
}
  0x23   :  { %19 = dma.hbm_to_vmem [thread:$0]  %s682_s0, 48, %s17_s27, [#allocation3]  }
  0x24   :  { %s565_s15 = scalar_lea.hbm %s684_s2, 2176 }
  0x25   :  { %p566_p2 = scmp.ne.s32.totalorder %s684_s2, %s565_s15  ;;  %p569_p3 = scmp.lt.u32.totalorder %s565_s15, %s684_s2 }
  0x27   :  { %p571_p4 = pnand %p569_p3, %p566_p2 }
  0x29   :  { %574 = shalt.err (!%p571_p4)
}
  0x2a   :  { %s575_s20 = scalar_lea.vmem %s38_s29, 2176  ;;  %p580_p6 = scmp.lt.s32.totalorder %s38_s29, %s38_s29 }
  0x2b   :  { %p576_p5 = scmp.ne.s32.totalorder %s38_s29, %s575_s20  ;;  %p581_p7 = scmp.lt.s32.totalorder %s575_s20, %s575_s20 }
  0x2d   :  { %p582_p8 = por %p581_p7, %p580_p6 }
  0x2f   :  { %p583_p9 = pnand %p582_p8, %p576_p5 }
  0x31   :  { %586 = shalt.err (!%p583_p9)
}
  0x32   :  { %43 = dma.hbm_to_vmem [thread:$0]  %s684_s2, 2176, %s38_s29, [#allocation5], %s592_s22, %s592_s22, %s593_s23  }
  0x33   :  { %587 = dma.done.wait [#allocation3], 48  }
  0x34   :  { %588 = vsyncadd [#allocation3], 4294967248 }
  0x35   :  { %589 = dma.done.wait [#allocation5], 6400  }
  0x36   :  { %590 = vsyncadd [#allocation5], 4294960896  ;;  %v596_v0 = vmov 0.0   ;;  %vm597_vm0 = vmmov 0   ;;  %v106_v1 = vlaneseq  ;;  %v70_v2 = vld [vmem:[#allocation4 + $0x80] sm:$0xff]  ;;  %v71_v3 = vld [vmem:[#allocation4 + $0x88] sm:$0xff] }
  0x37   :  { %416 = vmatprep.subr.mxu1 %v596_v0  ;;  %418 = vmatprep.mubr.msk.f32.mxu1 %vm597_vm0, %v596_v0  ;;  %v54_v4 = vld [vmem:[#allocation4] sm:$0xff]  ;;  %v456_v5 = vpack.c.bf16 %v71_v3, %v70_v2  ;;  %v55_v6 = vld [vmem:[#allocation4 + $0x8] sm:$0xff]  ;;  %v72_v7 = vld [vmem:[#allocation4 + $0x90] sm:$0xff]  ;;  %vm123_vm1 = vcmask 1043456   ;;  %vm120_vm2 = vcmask 31744   ;;  %v598_v45 = vmov 0.0|0.0  }
  0x38   :  { %v73_v8 = vld [vmem:[#allocation4 + $0x98] sm:$0xff]  ;;  %v458_v9 = vpack.c.bf16 %v55_v6, %v54_v4  ;;  %v56_v11 = vld [vmem:[#allocation4 + $0x10] sm:$0xff]  ;;  %v74_v13 = vld [vmem:[#allocation4 + $0xa0] sm:$0xff]  ;;  %v665_v15 = vshrl.u32 %v106_v1, 7 }
  0x39   :  { %v460_v10 = vpack.c.bf16 %v73_v8, %v72_v7  ;;  %v57_v12 = vld [vmem:[#allocation4 + $0x18] sm:$0xff]  ;;  %457 = vmatprep.subr.bf16.mxu0 %v456_v5  ;;  %v75_v14 = vld [vmem:[#allocation4 + $0xa8] sm:$0xff]  ;;  %v58_v18 = vld [vmem:[#allocation4 + $0x20] sm:$0xff] }
  0x3a   :  { %459 = vmatpush3.bf16.msra.mxu0 %v458_v9  ;;  %v462_v16 = vpack.c.bf16 %v57_v12, %v56_v11  ;;  %v464_v17 = vpack.c.bf16 %v75_v14, %v74_v13  ;;  %v59_v19 = vld [vmem:[#allocation4 + $0x28] sm:$0xff]  ;;  %v76_v20 = vld [vmem:[#allocation4 + $0xb0] sm:$0xff]  ;;  %v77_v21 = vld [vmem:[#allocation4 + $0xb8] sm:$0xff]  ;;  %v112_v22 = vsub.s32 1, %v665_v15  ;;  %v116_v23 = vsub.s32 2, %v665_v15 }
  0x3b   :  { %461 = vmatprep.subr.bf16.mxu0 %v460_v10  ;;  %v466_v24 = vpack.c.bf16 %v59_v19, %v58_v18  ;;  %v468_v25 = vpack.c.bf16 %v77_v21, %v76_v20  ;;  %v60_v26 = vld [vmem:[#allocation4 + $0x30] sm:$0xff]  ;;  %v61_v27 = vld [vmem:[#allocation4 + $0x38] sm:$0xff]  ;;  %v78_v28 = vld [vmem:[#allocation4 + $0xc0] sm:$0xff]  ;;  %v108_v8 = vsub.s32 0, %v665_v15 }
  0x3c   :  { %v79_v29 = vld [vmem:[#allocation4 + $0xc8] sm:$0xff]  ;;  %v669_v30 = vld [vmem:[#allocation2] sm:$0x7]  ;;  %v86_v33 = vld [vmem:[#allocation4 + $0x100] sm:$0xf]  ;;  %v470_v36 = vpack.c.bf16 %v61_v27, %v60_v26 }
  0x3d   :  { %v113_v31 = vrot.slane %v669_v30, %v112_v22  ;;  %v117_v32 = vrot.slane %v669_v30, %v116_v23  ;;  %v87_v34 = vld [vmem:[#allocation6] sm:$0xff]  ;;  %v88_v35 = vld [vmem:[#allocation6 + $0x8] sm:$0xff]  ;;  %417 = vmatpush3.msk.msra.mxu1 %vm123_vm1, %v86_v33  ;;  %v89_v38 = vld [vmem:[#allocation6 + $0x10] sm:$0xff]  ;;  %v472_v40 = vpack.c.bf16 %v79_v29, %v78_v28  ;;  %v109_v13 = vrot.slane %v669_v30, %v108_v8 }
  0x3e   :  { %463 = vmatpush3.bf16.msra.mxu0 %v462_v16  ;;  %v489_v37 = vpack.c.bf16 %v88_v35, %v87_v34  ;;  %v90_v39 = vld [vmem:[#allocation6 + $0x18] sm:$0xff]  ;;  %v63_v42 = vld [vmem:[#allocation4 + $0x48] sm:$0xff]  ;;  %v80_v43 = vld [vmem:[#allocation4 + $0xd0] sm:$0xff]  ;;  %488 = vmatprep.subr.bf16.mxu1 %v598_v45  ;;  %v599_v29 = vmov 1.0  }
  0x3f   :  { %465 = vmatprep.subr.bf16.mxu0 %v464_v17  ;;  %v62_v41 = vld [vmem:[#allocation4 + $0x40] sm:$0xff]  ;;  %191 = vmatprep.mubr.f32.mxu0 %v113_v31  ;;  %v81_v44 = vld [vmem:[#allocation4 + $0xd8] sm:$0xff]  ;;  %v492_v46 = vpack.c.bf16 %v90_v39, %v89_v38  ;;  %v91_v48 = vld [vmem:[#allocation6 + $0x20] sm:$0xff] }
  0x40   :  { %419 = vmatmul.mubr.msk.f32.vlgmr.msra.gmra.mrb[0].mxu1 %vm120_vm2, %v117_v32  ;;  %v474_v47 = vpack.c.bf16 %v63_v42, %v62_v41  ;;  %v92_v49 = vld [vmem:[#allocation6 + $0x28] sm:$0xff]  ;;  %v476_v50 = vpack.c.bf16 %v81_v44, %v80_v43  ;;  %v65_v52 = vld [vmem:[#allocation4 + $0x58] sm:$0xff]  ;;  %v82_v53 = vld [vmem:[#allocation4 + $0xe0] sm:$0xff] }
  0x41   :  { %490 = vmatpush3.bf16.msra.mxu1 %v489_v37  ;;  %453 = vmatprep.mubr.msk.f32.mxu1 %vm597_vm0, %v596_v0  ;;  %v64_v51 = vld [vmem:[#allocation4 + $0x50] sm:$0xff]  ;;  %v83_v54 = vld [vmem:[#allocation4 + $0xe8] sm:$0xff]  ;;  %v495_v55 = vpack.c.bf16 %v92_v49, %v91_v48  ;;  %v93_v57 = vld [vmem:[#allocation6 + $0x30] sm:$0xff] }
  0x42   :  { %467 = vmatpush3.bf16.msra.mxu0 %v466_v24  ;;  %491 = vmatprep.subr.bf16.mxu1 %v598_v45  ;;  %v478_v56 = vpack.c.bf16 %v65_v52, %v64_v51  ;;  %v94_v58 = vld [vmem:[#allocation6 + $0x38] sm:$0xff]  ;;  %v480_v59 = vpack.c.bf16 %v83_v54, %v82_v53  ;;  %v67_v61 = vld [vmem:[#allocation4 + $0x68] sm:$0xff]  ;;  %v84_v62 = vld [vmem:[#allocation4 + $0xf0] sm:$0xff] }
  0x43   :  { %469 = vmatprep.subr.bf16.mxu0 %v468_v25  ;;  %v66_v60 = vld [vmem:[#allocation4 + $0x60] sm:$0xff]  ;;  %v85_v63 = vld [vmem:[#allocation4 + $0xf8] sm:$0xff]  ;;  %v498_v1 = vpack.c.bf16 %v94_v58, %v93_v57  ;;  %v95_v3 = vld [vmem:[#allocation6 + $0x40] sm:$0xff] }
  0x44   :  { %v482_v2 = vpack.c.bf16 %v67_v61, %v66_v60  ;;  %v96_v4 = vld [vmem:[#allocation6 + $0x48] sm:$0xff]  ;;  %v484_v5 = vpack.c.bf16 %v85_v63, %v84_v62  ;;  %v69_v7 = vld [vmem:[#allocation4 + $0x78] sm:$0xff]  ;;  %v98_v12 = vld [vmem:[#allocation6 + $0x58] sm:$0xff] }
  0x45   :  { %493 = vmatpush3.bf16.msra.mxu1 %v492_v46  ;;  %v68_v6 = vld [vmem:[#allocation4 + $0x70] sm:$0xff]  ;;  %v501_v9 = vpack.c.bf16 %v96_v4, %v95_v3  ;;  %v97_v11 = vld [vmem:[#allocation6 + $0x50] sm:$0xff]  ;;  %v99_v16 = vld [vmem:[#allocation6 + $0x60] sm:$0xff] }
  0x46   :  { %471 = vmatpush3.bf16.msra.mxu0 %v470_v36  ;;  %494 = vmatprep.subr.bf16.mxu1 %v598_v45  ;;  %v486_v10 = vpack.c.bf16 %v69_v7, %v68_v6  ;;  %v504_v14 = vpack.c.bf16 %v98_v12, %v97_v11  ;;  %v100_v17 = vld [vmem:[#allocation6 + $0x68] sm:$0xff]  ;;  %v101_v18 = vld [vmem:[#allocation6 + $0x70] sm:$0xff]  ;;  %v102_v19 = vld [vmem:[#allocation6 + $0x78] sm:$0xff] }
  0x47   :  { %473 = vmatprep.subr.bf16.mxu0 %v472_v40  ;;  %v507_v15 = vpack.c.bf16 %v100_v17, %v99_v16  ;;  %v510_v20 = vpack.c.bf16 %v102_v19, %v101_v18  ;;  %v103_v25 = vld [vmem:[#allocation6 + $0x80] sm:$0x1]  ;;  %v104_v30 = vld [vmem:[#allocation6 + $0x81] sm:$0x1] }
  0x49   :  { %496 = vmatpush3.bf16.msra.mxu1 %v495_v55 }
  0x4a   :  { %475 = vmatpush3.bf16.msra.mxu0 %v474_v47  ;;  %497 = vmatprep.subr.bf16.mxu1 %v598_v45 }
  0x4b   :  { %477 = vmatprep.subr.bf16.mxu0 %v476_v50 }
  0x4d   :  { %499 = vmatpush3.bf16.msra.mxu1 %v498_v1 }
  0x4e   :  { %479 = vmatpush3.bf16.msra.mxu0 %v478_v56  ;;  %500 = vmatprep.subr.bf16.mxu1 %v598_v45 }
  0x4f   :  { %481 = vmatprep.subr.bf16.mxu0 %v480_v59 }
  0x51   :  { %502 = vmatpush3.bf16.msra.mxu1 %v501_v9 }
  0x52   :  { %483 = vmatpush3.bf16.msra.mxu0 %v482_v2  ;;  %503 = vmatprep.subr.bf16.mxu1 %v598_v45 }
  0x53   :  { %485 = vmatprep.subr.bf16.mxu0 %v484_v5 }
  0x55   :  { %505 = vmatpush3.bf16.msra.mxu1 %v504_v14 }
  0x56   :  { %487 = vmatpush3.bf16.msra.mxu0 %v486_v10  ;;  %506 = vmatprep.subr.bf16.mxu1 %v598_v45 }
  0x59   :  { %192 = vmatmul.mubr.f32.vlgmr.msra.gmra.mrb[0].mxu0 %v109_v13  ;;  %508 = vmatpush3.bf16.msra.mxu1 %v507_v15 }
  0x5a   :  { %509 = vmatprep.subr.bf16.mxu1 %v598_v45 }
  0x5d   :  { %511 = vmatpush3.bf16.msra.mxu1 %v510_v20 }
 0x113   :  { %v263_v21 = vpop.f32.mrb[0].mxu1 }
 0x114   :  { %v420_v22 = vpop.f32.mrb[1].mxu1 }
 0x12c   :  { %v394_v23 = vpop.f32.mrb[0].mxu0 }
 0x12d   :  { %v395_v24 = vpop.f32.mrb[1].mxu0 }
 0x12e   :  { %v396_v26 = vadd.f32 %v395_v24, %v394_v23 }
 0x130   :  { %v194_v27 = vadd.f32 %v396_v26, %v103_v25 }
 0x132   :  { %v264_v28 = vadd.f32 %v263_v21, %v194_v27 }
 0x134   :  { %vm272_vm3 = vcmp.gt.f32.partialorder %v264_v28, 1.0 }
 0x135   :  { %454 = vmatmul.mubr.msk.f32.vlgmr.msra.gmra.mrb[2].mxu1 %vm272_vm3, %v599_v29 }
 0x208   :  { %v341_v31 = vpop.f32.mrb[2].mxu1 }
 0x209   :  { %v342_v32 = vadd.f32 %v341_v31, %v104_v30  ;;  %v455_v33 = vpop.f32.mrb[3].mxu1 }
 0x20b   :  { %vm347_vm4 = vcmp.gt.f32.partialorder %v342_v32, 1.0 }
 0x20c   :  { %v361_v34 = vsel %vm347_vm4, 1.0, %v596_v0 }
 0x20d   :  { %350 = vst [vmem:[%s685_s3] sm:$0x1] %v361_v34 }
 0x20e   :  { %355 = vsyncpa [#allocation3], 1 }
 0x20f   :  { %356 = vsyncpa [#allocation5], 1 }

</bundles_post_ra>
